<compile_context>
chip_gen: v5e
topology: v5e:2x2
jax: 0.10.0
libtpu: 0.0.40
codegen_flags: <defaults>
</compile_context>

<pallas_src>
import functools

import jax
import jax.numpy as jnp
from jax import lax
from jax.experimental import pallas as pl
from jax.experimental.pallas import tpu as pltpu


def _round_up(x: int, m: int) -> int:
    return (x + m - 1) // m * m


# ----------------------- kernel 1: final_proj + matchability -----------------

def _proj_kernel(x_ref, wp_ref, bp_ref, wm_ref, bm_ref, md_ref, m_ref, *, inv_scale):
    # x_ref : VMEM (TILE, D) native dtype descriptor tile (cast to f32 in-kernel)
    # wp_ref: VMEM (D, D)    f32  final_proj weight, pre-transposed (in, out)
    # bp_ref: VMEM (1, D)    f32  final_proj bias
    # wm_ref: VMEM (1, D)    f32  matchability weight
    # bm_ref: VMEM (1, 1)    f32  matchability bias
    # md_ref: VMEM (TILE, D) f32  scaled projected descriptors
    # m_ref : VMEM (TILE, 1) f32  sigmoid(matchability logits)
    x = x_ref[...].astype(jnp.float32)                                   # in-kernel cast
    y = jnp.dot(x, wp_ref[...], preferred_element_type=jnp.float32)      # MXU
    md_ref[...] = (y + bp_ref[...]) * inv_scale
    z = jnp.sum(x * wm_ref[...], axis=-1, keepdims=True) + bm_ref[...]   # VPU + XLU
    m_ref[...] = jax.nn.sigmoid(z)                                       # EUP


def _proj_matchability(x_tokens, wp_t, bp_row, wm_row, bm_11, *, dim):
    """x_tokens: (T, D) native dtype -> (mdesc (T, D) f32, m (T, 1) f32)."""
    t, d = x_tokens.shape
    # Token tile: 512 rows (multiple of 8 / lane friendly) when large, else the
    # full (8-rounded) extent; block == full array dims satisfies the (8,128) rule.
    tile = 512 if t >= 512 else _round_up(t, 8)
    t_pad = _round_up(t, tile)
    if t_pad != t:
        x_tokens = jnp.pad(x_tokens, ((0, t_pad - t), (0, 0)))
    grid = (t_pad // tile,)

    kernel = functools.partial(_proj_kernel, inv_scale=float(1.0 / (dim ** 0.25)))
    mdesc, m = pl.pallas_call(
        kernel,
        out_shape=(
            jax.ShapeDtypeStruct((t_pad, d), jnp.float32),
            jax.ShapeDtypeStruct((t_pad, 1), jnp.float32),
        ),
        grid_spec=pltpu.PrefetchScalarGridSpec(
            num_scalar_prefetch=0,
            grid=grid,
            in_specs=[
                pl.BlockSpec((tile, d), lambda i: (i, 0)),       # token tile (pipelined)
                pl.BlockSpec((d, d), lambda i: (0, 0)),          # resident proj weight
                pl.BlockSpec((1, d), lambda i: (0, 0)),          # resident proj bias
                pl.BlockSpec((1, d), lambda i: (0, 0)),          # resident match weight
                pl.BlockSpec((1, 1), lambda i: (0, 0)),          # resident match bias
            ],
            out_specs=(
                pl.BlockSpec((tile, d), lambda i: (i, 0)),
                pl.BlockSpec((tile, 1), lambda i: (i, 0)),
            ),
        ),
        compiler_params=pltpu.CompilerParams(
            dimension_semantics=("parallel",)),                  # 2-TC sharding on v7x
    )(x_tokens, wp_t, bp_row, wm_row, bm_11)
    return mdesc[:t], m[:t]


# ----------------- kernel 2: sim + double log-softmax + certainties ----------

def _scores_kernel(md0_ref, md1_ref, m0_ref, m1_ref, scores_ref, sim_ref):
    # md0_ref: (M, D) f32, md1_ref: (N, D) f32 (leading batch dim squeezed)
    # m0_ref : (M, 1) f32, m1_ref: (1, N) f32
    a = md0_ref[...]
    b = md1_ref[...]
    sim = lax.dot_general(                                       # MXU: (M,D) x (N,D)^T
        a, b, dimension_numbers=(((1,), (1,)), ((), ())),
        preferred_element_type=jnp.float32)
    sim_ref[...] = sim

    # log_softmax along axis 1 (rows) and axis 0 (columns) of sim.
    row_max = jnp.max(sim, axis=1, keepdims=True)
    row_lse = jnp.log(jnp.sum(jnp.exp(sim - row_max), axis=1, keepdims=True)) + row_max
    col_max = jnp.max(sim, axis=0, keepdims=True)
    col_lse = jnp.log(jnp.sum(jnp.exp(sim - col_max), axis=0, keepdims=True)) + col_max

    cert = jnp.log(m0_ref[...]) + jnp.log(m1_ref[...])           # (M,1) + (1,N)
    scores_ref[...] = (sim - row_lse) + (sim - col_lse) + cert


def _assignment_scores(mdesc0, mdesc1, m0_col, m1_row):
    bsz, m, d = mdesc0.shape
    n = mdesc1.shape[1]
    return pl.pallas_call(
        _scores_kernel,
        out_shape=(
            jax.ShapeDtypeStruct((bsz, m, n), jnp.float32),      # scores
            jax.ShapeDtypeStruct((bsz, m, n), jnp.float32),      # sim
        ),
        grid_spec=pltpu.PrefetchScalarGridSpec(
            num_scalar_prefetch=0,
            grid=(bsz,),
            in_specs=[
                pl.BlockSpec((None, m, d), lambda b: (b, 0, 0)),
                pl.BlockSpec((None, n, d), lambda b: (b, 0, 0)),
                pl.BlockSpec((None, m, 1), lambda b: (b, 0, 0)),
                pl.BlockSpec((None, 1, n), lambda b: (b, 0, 0)),
            ],
            out_specs=(
                pl.BlockSpec((None, m, n), lambda b: (b, 0, 0)),
                pl.BlockSpec((None, m, n), lambda b: (b, 0, 0)),
            ),
        ),
        compiler_params=pltpu.CompilerParams(dimension_semantics=("parallel",)),
    )(mdesc0, mdesc1, m0_col, m1_row)


# ------------------------------- public wrapper -------------------------------

@jax.jit
def match_assignment(desc0, desc1, wp, bp, wm, bm):
    """JAX/Pallas port of MatchAssignment.forward.

    desc0: [B, M, D], desc1: [B, N, D] (any float dtype; cast to f32 in-kernel,
    matching @custom_fwd(cast_inputs=float32)).
    wp: [D, D], bp: [D]  (final_proj);  wm: [1, D], bm: [1]  (matchability).
    Returns (scores [B,M,N], sim [B,M,N], m0 [B,M,1], m1 [B,N,1]) all f32.
    """
    bsz, m, d = desc0.shape
    n = desc1.shape[1]

    wp_t = wp.astype(jnp.float32).T                   # (D, D): kernel does x @ wp_t
    bp_row = bp.astype(jnp.float32).reshape(1, d)
    wm_row = wm.astype(jnp.float32).reshape(1, d)
    bm_11 = bm.astype(jnp.float32).reshape(1, 1)

    # One tiled token pass per descriptor set (no HBM concat copy; reshape is free).
    md0_flat, m0_flat = _proj_matchability(
        desc0.reshape(bsz * m, d), wp_t, bp_row, wm_row, bm_11, dim=d)
    md1_flat, m1_flat = _proj_matchability(
        desc1.reshape(bsz * n, d), wp_t, bp_row, wm_row, bm_11, dim=d)

    mdesc0 = md0_flat.reshape(bsz, m, d)
    mdesc1 = md1_flat.reshape(bsz, n, d)
    m0 = m0_flat.reshape(bsz, m, 1)
    m1 = m1_flat.reshape(bsz, n, 1)

    scores, sim = _assignment_scores(mdesc0, mdesc1, m0, m1.reshape(bsz, 1, n))
    return scores, sim, m0, m1


if __name__ == "__main__":
    key = jax.random.PRNGKey(0)
    k_wp, k_bp, k_wm, k_bm, k_d0, k_d1 = jax.random.split(key, 6)

    B, M, N, D = 2, 16, 12, 32

    bound = 1.0 / (D ** 0.5)
    wp = jax.random.uniform(k_wp, (D, D), jnp.float32, -bound, bound)   # final_proj.weight (out,in)
    bp = jax.random.uniform(k_bp, (D,), jnp.float32, -bound, bound)
    wm = jax.random.uniform(k_wm, (1, D), jnp.float32, -bound, bound)   # matchability.weight
    bm = jax.random.uniform(k_bm, (1,), jnp.float32, -bound, bound)

    # bf16 descriptors: read in native dtype, cast to f32 inside the kernel.
    desc0 = jax.random.normal(k_d0, (B, M, D), jnp.float32).astype(jnp.bfloat16)
    desc1 = jax.random.normal(k_d1, (B, N, D), jnp.float32).astype(jnp.bfloat16)

    scores, sim, m0, m1 = match_assignment(desc0, desc1, wp, bp, wm, bm)
    jax.block_until_ready((scores, sim, m0, m1))

    # ------------------ plain-JAX reference (mirrors the torch forward) -------
    hp = lax.Precision.HIGHEST
    d0 = desc0.astype(jnp.float32)
    d1 = desc1.astype(jnp.float32)
    md0 = (jnp.einsum("bmd,kd->bmk", d0, wp, precision=hp) + bp) / (D ** 0.25)
    md1 = (jnp.einsum("bnd,kd->bnk", d1, wp, precision=hp) + bp) / (D ** 0.25)
    sim_ref = jnp.einsum("bmd,bnd->bmn", md0, md1, precision=hp)
    z0 = jnp.einsum("bmd,kd->bmk", d0, wm, precision=hp) + bm
    z1 = jnp.einsum("bnd,kd->bnk", d1, wm, precision=hp) + bm
    m0_ref = jax.nn.sigmoid(z0)
    m1_ref = jax.nn.sigmoid(z1)
    cert = jnp.log(m0_ref) + jnp.swapaxes(jnp.log(m1_ref), 1, 2)
    s0 = jax.nn.log_softmax(sim_ref, axis=2)
    s1 = jnp.swapaxes(jax.nn.log_softmax(jnp.swapaxes(sim_ref, 1, 2), axis=2), 1, 2)
    scores_ref = s0 + s1 + cert

    assert scores.shape == (B, M, N) and sim.shape == (B, M, N)
    assert m0.shape == (B, M, 1) and m1.shape == (B, N, 1)
    assert jnp.allclose(m0, m0_ref, rtol=1e-4, atol=1e-4)
    assert jnp.allclose(m1, m1_ref, rtol=1e-4, atol=1e-4)
    # Loose tolerance hedges against MXU f32 pass-count differences vs the
    # HIGHEST-precision XLA reference; any formula/layout bug is >> 2e-2.
    assert jnp.allclose(sim, sim_ref, rtol=2e-2, atol=2e-2)
    assert jnp.allclose(scores, scores_ref, rtol=2e-2, atol=2e-2)

    print("KERNEL_OK")
</pallas_src>

<mosaic_0001>
module attributes {stable_mosaic.version = 11 : i64} {
  func.func @_proj_kernel(%arg0: i32, %arg1: memref<24x32xbf16, #tpu.memory_space<vmem>>, %arg2: memref<32x32xf32, #tpu.memory_space<vmem>>, %arg3: memref<1x32xf32, #tpu.memory_space<vmem>>, %arg4: memref<1x32xf32, #tpu.memory_space<vmem>>, %arg5: memref<1x1xf32, #tpu.memory_space<vmem>>, %arg6: memref<24x32xf32, #tpu.memory_space<vmem>>, %arg7: memref<24x1xf32, #tpu.memory_space<vmem>>) attributes {dimension_semantics = [#tpu.dimension_semantics<parallel>], iteration_bounds = array<i64: 1>, scalar_prefetch = 0 : i64, scratch_operands = 0 : i64, tpu.core_type = #tpu.core_type<tc>, window_params = [{transform_indices = @transform_0, window_bounds = array<i64: 24, 32>}, {pipeline_mode = #tpu.pipeline_mode<synchronous>, transform_indices = @transform_1, window_bounds = array<i64: 32, 32>}, {pipeline_mode = #tpu.pipeline_mode<synchronous>, transform_indices = @transform_2, window_bounds = array<i64: 1, 32>}, {pipeline_mode = #tpu.pipeline_mode<synchronous>, transform_indices = @transform_3, window_bounds = array<i64: 1, 32>}, {pipeline_mode = #tpu.pipeline_mode<synchronous>, transform_indices = @transform_4, window_bounds = array<i64: 1, 1>}, {transform_indices = @transform_5, window_bounds = array<i64: 24, 32>}, {transform_indices = @transform_6, window_bounds = array<i64: 24, 1>}]} {
    %c0 = arith.constant 0 : index
    %c0_0 = arith.constant 0 : index
    %0 = vector.load %arg1[%c0, %c0_0] : memref<24x32xbf16, #tpu.memory_space<vmem>>, vector<24x32xbf16>
    %1 = arith.extf %0 : vector<24x32xbf16> to vector<24x32xf32>
    %c0_1 = arith.constant 0 : index
    %c0_2 = arith.constant 0 : index
    %2 = vector.load %arg2[%c0_1, %c0_2] : memref<32x32xf32, #tpu.memory_space<vmem>>, vector<32x32xf32>
    %cst = arith.constant dense<0.000000e+00> : vector<24x32xf32>
    %3 = tpu.matmul %1, %2, %cst {dimension_numbers = #tpu.dot_dimension_numbers<[1], [0], [0], [1], [0, 0, 1, 1], [], []>} : vector<24x32xf32>, vector<32x32xf32>, vector<24x32xf32> -> vector<24x32xf32>
    %c0_3 = arith.constant 0 : index
    %c0_4 = arith.constant 0 : index
    %4 = vector.load %arg3[%c0_3, %c0_4] : memref<1x32xf32, #tpu.memory_space<vmem>>, vector<1x32xf32>
    %5 = vector.broadcast %4 : vector<1x32xf32> to vector<24x32xf32>
    %6 = arith.addf %3, %5 : vector<24x32xf32>
    %cst_5 = arith.constant 0.420448214 : f32
    %7 = vector.broadcast %cst_5 : f32 to vector<24x32xf32>
    %8 = arith.mulf %6, %7 : vector<24x32xf32>
    %c0_6 = arith.constant 0 : index
    %c0_7 = arith.constant 0 : index
    %9 = vector.load %arg6[%c0_6, %c0_7] : memref<24x32xf32, #tpu.memory_space<vmem>>, vector<24x32xf32>
    tpu.vector_store %arg6[%c0_6, %c0_7], %8 {strides = array<i32>} : memref<24x32xf32, #tpu.memory_space<vmem>>, vector<24x32xf32>,
    %c0_8 = arith.constant 0 : index
    %c0_9 = arith.constant 0 : index
    %10 = vector.load %arg4[%c0_8, %c0_9] : memref<1x32xf32, #tpu.memory_space<vmem>>, vector<1x32xf32>
    %11 = vector.broadcast %10 : vector<1x32xf32> to vector<24x32xf32>
    %12 = arith.mulf %1, %11 : vector<24x32xf32>
    %cst_10 = arith.constant dense<0.000000e+00> : vector<24xf32>
    %13 = vector.multi_reduction <add>, %12, %cst_10 [1] : vector<24x32xf32> to vector<24xf32>
    %14 = vector.shape_cast %13 : vector<24xf32> to vector<24x1xf32>
    %c0_11 = arith.constant 0 : index
    %c0_12 = arith.constant 0 : index
    %15 = vector.load %arg5[%c0_11, %c0_12] : memref<1x1xf32, #tpu.memory_space<vmem>>, vector<1x1xf32>
    %16 = vector.broadcast %15 : vector<1x1xf32> to vector<24x1xf32>
    %17 = arith.addf %14, %16 : vector<24x1xf32>
    %18 = arith.negf %17 : vector<24x1xf32>
    %19 = math.exp %18 : vector<24x1xf32>
    %cst_13 = arith.constant 1.000000e+00 : f32
    %20 = vector.broadcast %cst_13 : f32 to vector<24x1xf32>
    %21 = arith.addf %20, %19 : vector<24x1xf32>
    %22 = arith.divf %20, %21 : vector<24x1xf32>
    %c0_14 = arith.constant 0 : index
    %c0_15 = arith.constant 0 : index
    %23 = vector.load %arg7[%c0_14, %c0_15] : memref<24x1xf32, #tpu.memory_space<vmem>>, vector<24x1xf32>
    tpu.vector_store %arg7[%c0_14, %c0_15], %22 {strides = array<i32>} : memref<24x1xf32, #tpu.memory_space<vmem>>, vector<24x1xf32>,
    return
  }
  func.func @transform_0(%arg0: i32) -> (i32, i32) {
    %c0_i32 = arith.constant 0 : i32
    %c0_i32_0 = arith.constant 0 : i32
    return %arg0, %c0_i32 : i32, i32
  }
  func.func @transform_1(%arg0: i32) -> (i32, i32) {
    %c0_i32 = arith.constant 0 : i32
    %c0_i32_0 = arith.constant 0 : i32
    %c0_i32_1 = arith.constant 0 : i32
    return %c0_i32, %c0_i32_0 : i32, i32
  }
  func.func @transform_2(%arg0: i32) -> (i32, i32) {
    %c0_i32 = arith.constant 0 : i32
    %c0_i32_0 = arith.constant 0 : i32
    %c0_i32_1 = arith.constant 0 : i32
    return %c0_i32, %c0_i32_0 : i32, i32
  }
  func.func @transform_3(%arg0: i32) -> (i32, i32) {
    %c0_i32 = arith.constant 0 : i32
    %c0_i32_0 = arith.constant 0 : i32
    %c0_i32_1 = arith.constant 0 : i32
    return %c0_i32, %c0_i32_0 : i32, i32
  }
  func.func @transform_4(%arg0: i32) -> (i32, i32) {
    %c0_i32 = arith.constant 0 : i32
    %c0_i32_0 = arith.constant 0 : i32
    %c0_i32_1 = arith.constant 0 : i32
    return %c0_i32, %c0_i32_0 : i32, i32
  }
  func.func @transform_5(%arg0: i32) -> (i32, i32) {
    %c0_i32 = arith.constant 0 : i32
    %c0_i32_0 = arith.constant 0 : i32
    return %arg0, %c0_i32 : i32, i32
  }
  func.func @transform_6(%arg0: i32) -> (i32, i32) {
    %c0_i32 = arith.constant 0 : i32
    %c0_i32_0 = arith.constant 0 : i32
    return %arg0, %c0_i32 : i32, i32
  }
}

module attributes {stable_mosaic.version = 11 : i64} {
  func.func @_proj_kernel(%arg0: i32, %arg1: memref<32x32xbf16, #tpu.memory_space<vmem>>, %arg2: memref<32x32xf32, #tpu.memory_space<vmem>>, %arg3: memref<1x32xf32, #tpu.memory_space<vmem>>, %arg4: memref<1x32xf32, #tpu.memory_space<vmem>>, %arg5: memref<1x1xf32, #tpu.memory_space<vmem>>, %arg6: memref<32x32xf32, #tpu.memory_space<vmem>>, %arg7: memref<32x1xf32, #tpu.memory_space<vmem>>) attributes {dimension_semantics = [#tpu.dimension_semantics<parallel>], iteration_bounds = array<i64: 1>, scalar_prefetch = 0 : i64, scratch_operands = 0 : i64, tpu.core_type = #tpu.core_type<tc>, window_params = [{transform_indices = @transform_0, window_bounds = array<i64: 32, 32>}, {pipeline_mode = #tpu.pipeline_mode<synchronous>, transform_indices = @transform_1, window_bounds = array<i64: 32, 32>}, {pipeline_mode = #tpu.pipeline_mode<synchronous>, transform_indices = @transform_2, window_bounds = array<i64: 1, 32>}, {pipeline_mode = #tpu.pipeline_mode<synchronous>, transform_indices = @transform_3, window_bounds = array<i64: 1, 32>}, {pipeline_mode = #tpu.pipeline_mode<synchronous>, transform_indices = @transform_4, window_bounds = array<i64: 1, 1>}, {transform_indices = @transform_5, window_bounds = array<i64: 32, 32>}, {transform_indices = @transform_6, window_bounds = array<i64: 32, 1>}]} {
    %c0 = arith.constant 0 : index
    %c0_0 = arith.constant 0 : index
    %0 = vector.load %arg1[%c0, %c0_0] : memref<32x32xbf16, #tpu.memory_space<vmem>>, vector<32x32xbf16>
    %1 = arith.extf %0 : vector<32x32xbf16> to vector<32x32xf32>
    %c0_1 = arith.constant 0 : index
    %c0_2 = arith.constant 0 : index
    %2 = vector.load %arg2[%c0_1, %c0_2] : memref<32x32xf32, #tpu.memory_space<vmem>>, vector<32x32xf32>
    %cst = arith.constant dense<0.000000e+00> : vector<32x32xf32>
    %3 = tpu.matmul %1, %2, %cst {dimension_numbers = #tpu.dot_dimension_numbers<[1], [0], [0], [1], [0, 0, 1, 1], [], []>} : vector<32x32xf32>, vector<32x32xf32>, vector<32x32xf32> -> vector<32x32xf32>
    %c0_3 = arith.constant 0 : index
    %c0_4 = arith.constant 0 : index
    %4 = vector.load %arg3[%c0_3, %c0_4] : memref<1x32xf32, #tpu.memory_space<vmem>>, vector<1x32xf32>
    %5 = vector.broadcast %4 : vector<1x32xf32> to vector<32x32xf32>
    %6 = arith.addf %3, %5 : vector<32x32xf32>
    %cst_5 = arith.constant 0.420448214 : f32
    %7 = vector.broadcast %cst_5 : f32 to vector<32x32xf32>
    %8 = arith.mulf %6, %7 : vector<32x32xf32>
    %c0_6 = arith.constant 0 : index
    %c0_7 = arith.constant 0 : index
    %9 = vector.load %arg6[%c0_6, %c0_7] : memref<32x32xf32, #tpu.memory_space<vmem>>, vector<32x32xf32>
    tpu.vector_store %arg6[%c0_6, %c0_7], %8 {strides = array<i32>} : memref<32x32xf32, #tpu.memory_space<vmem>>, vector<32x32xf32>,
    %c0_8 = arith.constant 0 : index
    %c0_9 = arith.constant 0 : index
    %10 = vector.load %arg4[%c0_8, %c0_9] : memref<1x32xf32, #tpu.memory_space<vmem>>, vector<1x32xf32>
    %11 = vector.broadcast %10 : vector<1x32xf32> to vector<32x32xf32>
    %12 = arith.mulf %1, %11 : vector<32x32xf32>
    %cst_10 = arith.constant dense<0.000000e+00> : vector<32xf32>
    %13 = vector.multi_reduction <add>, %12, %cst_10 [1] : vector<32x32xf32> to vector<32xf32>
    %14 = vector.shape_cast %13 : vector<32xf32> to vector<32x1xf32>
    %c0_11 = arith.constant 0 : index
    %c0_12 = arith.constant 0 : index
    %15 = vector.load %arg5[%c0_11, %c0_12] : memref<1x1xf32, #tpu.memory_space<vmem>>, vector<1x1xf32>
    %16 = vector.broadcast %15 : vector<1x1xf32> to vector<32x1xf32>
    %17 = arith.addf %14, %16 : vector<32x1xf32>
    %18 = arith.negf %17 : vector<32x1xf32>
    %19 = math.exp %18 : vector<32x1xf32>
    %cst_13 = arith.constant 1.000000e+00 : f32
    %20 = vector.broadcast %cst_13 : f32 to vector<32x1xf32>
    %21 = arith.addf %20, %19 : vector<32x1xf32>
    %22 = arith.divf %20, %21 : vector<32x1xf32>
    %c0_14 = arith.constant 0 : index
    %c0_15 = arith.constant 0 : index
    %23 = vector.load %arg7[%c0_14, %c0_15] : memref<32x1xf32, #tpu.memory_space<vmem>>, vector<32x1xf32>
    tpu.vector_store %arg7[%c0_14, %c0_15], %22 {strides = array<i32>} : memref<32x1xf32, #tpu.memory_space<vmem>>, vector<32x1xf32>,
    return
  }
  func.func @transform_0(%arg0: i32) -> (i32, i32) {
    %c0_i32 = arith.constant 0 : i32
    %c0_i32_0 = arith.constant 0 : i32
    return %arg0, %c0_i32 : i32, i32
  }
  func.func @transform_1(%arg0: i32) -> (i32, i32) {
    %c0_i32 = arith.constant 0 : i32
    %c0_i32_0 = arith.constant 0 : i32
    %c0_i32_1 = arith.constant 0 : i32
    return %c0_i32, %c0_i32_0 : i32, i32
  }
  func.func @transform_2(%arg0: i32) -> (i32, i32) {
    %c0_i32 = arith.constant 0 : i32
    %c0_i32_0 = arith.constant 0 : i32
    %c0_i32_1 = arith.constant 0 : i32
    return %c0_i32, %c0_i32_0 : i32, i32
  }
  func.func @transform_3(%arg0: i32) -> (i32, i32) {
    %c0_i32 = arith.constant 0 : i32
    %c0_i32_0 = arith.constant 0 : i32
    %c0_i32_1 = arith.constant 0 : i32
    return %c0_i32, %c0_i32_0 : i32, i32
  }
  func.func @transform_4(%arg0: i32) -> (i32, i32) {
    %c0_i32 = arith.constant 0 : i32
    %c0_i32_0 = arith.constant 0 : i32
    %c0_i32_1 = arith.constant 0 : i32
    return %c0_i32, %c0_i32_0 : i32, i32
  }
  func.func @transform_5(%arg0: i32) -> (i32, i32) {
    %c0_i32 = arith.constant 0 : i32
    %c0_i32_0 = arith.constant 0 : i32
    return %arg0, %c0_i32 : i32, i32
  }
  func.func @transform_6(%arg0: i32) -> (i32, i32) {
    %c0_i32 = arith.constant 0 : i32
    %c0_i32_0 = arith.constant 0 : i32
    return %arg0, %c0_i32 : i32, i32
  }
}

module attributes {stable_mosaic.version = 11 : i64} {
  func.func @_scores_kernel(%arg0: i32, %arg1: memref<1x16x32xf32, #tpu.memory_space<vmem>>, %arg2: memref<1x12x32xf32, #tpu.memory_space<vmem>>, %arg3: memref<1x16x1xf32, #tpu.memory_space<vmem>>, %arg4: memref<1x1x12xf32, #tpu.memory_space<vmem>>, %arg5: memref<1x16x12xf32, #tpu.memory_space<vmem>>, %arg6: memref<1x16x12xf32, #tpu.memory_space<vmem>>) attributes {dimension_semantics = [#tpu.dimension_semantics<parallel>], iteration_bounds = array<i64: 2>, scalar_prefetch = 0 : i64, scratch_operands = 0 : i64, tpu.core_type = #tpu.core_type<tc>, window_params = [{transform_indices = @transform_0, window_bounds = array<i64: 1, 16, 32>}, {transform_indices = @transform_1, window_bounds = array<i64: 1, 12, 32>}, {transform_indices = @transform_2, window_bounds = array<i64: 1, 16, 1>}, {transform_indices = @transform_3, window_bounds = array<i64: 1, 1, 12>}, {transform_indices = @transform_4, window_bounds = array<i64: 1, 16, 12>}, {transform_indices = @transform_5, window_bounds = array<i64: 1, 16, 12>}]} {
    %c0 = arith.constant 0 : index
    %c0_0 = arith.constant 0 : index
    %c0_1 = arith.constant 0 : index
    %0 = vector.load %arg1[%c0, %c0_0, %c0_1] : memref<1x16x32xf32, #tpu.memory_space<vmem>>, vector<1x16x32xf32>
    %1 = vector.shape_cast %0 : vector<1x16x32xf32> to vector<16x32xf32>
    %c0_2 = arith.constant 0 : index
    %c0_3 = arith.constant 0 : index
    %c0_4 = arith.constant 0 : index
    %2 = vector.load %arg2[%c0_2, %c0_3, %c0_4] : memref<1x12x32xf32, #tpu.memory_space<vmem>>, vector<1x12x32xf32>
    %3 = vector.shape_cast %2 : vector<1x12x32xf32> to vector<12x32xf32>
    %cst = arith.constant dense<0.000000e+00> : vector<16x12xf32>
    %4 = tpu.matmul %1, %3, %cst {dimension_numbers = #tpu.dot_dimension_numbers<[1], [1], [0], [0], [0, 0, 1, 0], [], []>} : vector<16x32xf32>, vector<12x32xf32>, vector<16x12xf32> -> vector<16x12xf32>
    %c0_5 = arith.constant 0 : index
    %c0_6 = arith.constant 0 : index
    %c0_7 = arith.constant 0 : index
    %5 = vector.load %arg6[%c0_5, %c0_6, %c0_7] : memref<1x16x12xf32, #tpu.memory_space<vmem>>, vector<1x16x12xf32>
    %6 = vector.shape_cast %5 : vector<1x16x12xf32> to vector<16x12xf32>
    %7 = vector.shape_cast %4 : vector<16x12xf32> to vector<1x16x12xf32>
    tpu.vector_store %arg6[%c0_5, %c0_6, %c0_7], %7 {strides = array<i32>} : memref<1x16x12xf32, #tpu.memory_space<vmem>>, vector<1x16x12xf32>,
    %cst_8 = arith.constant dense<0xFF800000> : vector<16xf32>
    %8 = vector.multi_reduction <maximumf>, %4, %cst_8 [1] : vector<16x12xf32> to vector<16xf32>
    %9 = vector.shape_cast %8 : vector<16xf32> to vector<16x1xf32>
    %10 = vector.broadcast %9 : vector<16x1xf32> to vector<16x12xf32>
    %11 = arith.subf %4, %10 : vector<16x12xf32>
    %12 = math.exp %11 : vector<16x12xf32>
    %cst_9 = arith.constant dense<0.000000e+00> : vector<16xf32>
    %13 = vector.multi_reduction <add>, %12, %cst_9 [1] : vector<16x12xf32> to vector<16xf32>
    %14 = vector.shape_cast %13 : vector<16xf32> to vector<16x1xf32>
    %15 = math.log %14 : vector<16x1xf32>
    %16 = arith.addf %15, %9 : vector<16x1xf32>
    %cst_10 = arith.constant dense<0xFF800000> : vector<12xf32>
    %17 = vector.multi_reduction <maximumf>, %4, %cst_10 [0] : vector<16x12xf32> to vector<12xf32>
    %18 = vector.shape_cast %17 : vector<12xf32> to vector<1x12xf32>
    %19 = vector.broadcast %18 : vector<1x12xf32> to vector<16x12xf32>
    %20 = arith.subf %4, %19 : vector<16x12xf32>
    %21 = math.exp %20 : vector<16x12xf32>
    %cst_11 = arith.constant dense<0.000000e+00> : vector<12xf32>
    %22 = vector.multi_reduction <add>, %21, %cst_11 [0] : vector<16x12xf32> to vector<12xf32>
    %23 = vector.shape_cast %22 : vector<12xf32> to vector<1x12xf32>
    %24 = math.log %23 : vector<1x12xf32>
    %25 = arith.addf %24, %18 : vector<1x12xf32>
    %c0_12 = arith.constant 0 : index
    %c0_13 = arith.constant 0 : index
    %c0_14 = arith.constant 0 : index
    %26 = vector.load %arg3[%c0_12, %c0_13, %c0_14] : memref<1x16x1xf32, #tpu.memory_space<vmem>>, vector<1x16x1xf32>
    %27 = vector.shape_cast %26 : vector<1x16x1xf32> to vector<16x1xf32>
    %28 = math.log %27 : vector<16x1xf32>
    %c0_15 = arith.constant 0 : index
    %c0_16 = arith.constant 0 : index
    %c0_17 = arith.constant 0 : index
    %29 = vector.load %arg4[%c0_15, %c0_16, %c0_17] : memref<1x1x12xf32, #tpu.memory_space<vmem>>, vector<1x1x12xf32>
    %30 = vector.shape_cast %29 : vector<1x1x12xf32> to vector<1x12xf32>
    %31 = math.log %30 : vector<1x12xf32>
    %32 = vector.broadcast %28 : vector<16x1xf32> to vector<16x12xf32>
    %33 = vector.broadcast %31 : vector<1x12xf32> to vector<16x12xf32>
    %34 = arith.addf %32, %33 : vector<16x12xf32>
    %35 = vector.broadcast %16 : vector<16x1xf32> to vector<16x12xf32>
    %36 = arith.subf %4, %35 : vector<16x12xf32>
    %37 = vector.broadcast %25 : vector<1x12xf32> to vector<16x12xf32>
    %38 = arith.subf %4, %37 : vector<16x12xf32>
    %39 = arith.addf %36, %38 : vector<16x12xf32>
    %40 = arith.addf %39, %34 : vector<16x12xf32>
    %c0_18 = arith.constant 0 : index
    %c0_19 = arith.constant 0 : index
    %c0_20 = arith.constant 0 : index
    %41 = vector.load %arg5[%c0_18, %c0_19, %c0_20] : memref<1x16x12xf32, #tpu.memory_space<vmem>>, vector<1x16x12xf32>
    %42 = vector.shape_cast %41 : vector<1x16x12xf32> to vector<16x12xf32>
    %43 = vector.shape_cast %40 : vector<16x12xf32> to vector<1x16x12xf32>
    tpu.vector_store %arg5[%c0_18, %c0_19, %c0_20], %43 {strides = array<i32>} : memref<1x16x12xf32, #tpu.memory_space<vmem>>, vector<1x16x12xf32>,
    return
  }
  func.func @transform_0(%arg0: i32) -> (i32, i32, i32) {
    %c0_i32 = arith.constant 0 : i32
    %c0_i32_0 = arith.constant 0 : i32
    %c0_i32_1 = arith.constant 0 : i32
    return %arg0, %c0_i32, %c0_i32_0 : i32, i32, i32
  }
  func.func @transform_1(%arg0: i32) -> (i32, i32, i32) {
    %c0_i32 = arith.constant 0 : i32
    %c0_i32_0 = arith.constant 0 : i32
    %c0_i32_1 = arith.constant 0 : i32
    return %arg0, %c0_i32, %c0_i32_0 : i32, i32, i32
  }
  func.func @transform_2(%arg0: i32) -> (i32, i32, i32) {
    %c0_i32 = arith.constant 0 : i32
    %c0_i32_0 = arith.constant 0 : i32
    %c0_i32_1 = arith.constant 0 : i32
    return %arg0, %c0_i32, %c0_i32_0 : i32, i32, i32
  }
  func.func @transform_3(%arg0: i32) -> (i32, i32, i32) {
    %c0_i32 = arith.constant 0 : i32
    %c0_i32_0 = arith.constant 0 : i32
    %c0_i32_1 = arith.constant 0 : i32
    return %arg0, %c0_i32, %c0_i32_0 : i32, i32, i32
  }
  func.func @transform_4(%arg0: i32) -> (i32, i32, i32) {
    %c0_i32 = arith.constant 0 : i32
    %c0_i32_0 = arith.constant 0 : i32
    %c0_i32_1 = arith.constant 0 : i32
    return %arg0, %c0_i32, %c0_i32_0 : i32, i32, i32
  }
  func.func @transform_5(%arg0: i32) -> (i32, i32, i32) {
    %c0_i32 = arith.constant 0 : i32
    %c0_i32_0 = arith.constant 0 : i32
    %c0_i32_1 = arith.constant 0 : i32
    return %arg0, %c0_i32, %c0_i32_0 : i32, i32, i32
  }
}

</mosaic_0001>

<bundles_post_ra>
// kernel: match_assignment.5
= control target key start
LH: loop header
LB: loop body
LE: loop exit
PB: predicated region body
PF: predicated region fallthrough
CT: control target
= control target key end

     0   :  { %s637_s18 = smov 0   ;;  %s703_s0 = inlined_call_operand.vmem [shape: f32[2,16,32], index: 0, kind: input, shape index: {}]   ;;  %s704_s1 = inlined_call_operand.vmem [shape: f32[2,12,32], index: 1, kind: input, shape index: {}]   ;;  %s705_s2 = inlined_call_operand.vmem [shape: f32[2,16,1], index: 2, kind: input, shape index: {}]   ;;  %s706_s3 = inlined_call_operand.vmem [shape: f32[2,1,12], index: 3, kind: input, shape index: {}]   ;;  %s707_s4 = inlined_call_operand.vmem [shape: f32[2,16,12], index: 4, kind: output, shape index: {0}]   ;;  %s708_s5 = inlined_call_operand.vmem [shape: f32[2,16,12], index: 5, kind: output, shape index: {1}]  }
   0x1 LB: > { %s539_s19 = sadd.s32 4294967295, %s604_s18   ;;  %p543_p0 = scmp.ge.s32.totalorder %s604_s18, 1  ;;  %s604_s18 = sphi %s637_s18, %s16_s18  }
   0x2   : > { %p218_p1 = scmp.lt.s32.totalorder %s604_s18, 3 }
   0x4   : > { %p219_p2 = pnand %p543_p0, %p218_p1 }
   0x5   : > { %p264_p3 = scmp.lt.s32.totalorder (!%p219_p2), %s539_s19, 1 }
   0x6   : > { %222 = sbr.rel (%p219_p2) target bundleno = 419 (0x1a3), region = 36 }
   0xb   : > { %s710_s19 = smov (!%p264_p3, %s539_s19), 1  ;;  %vm296_vm0 = vcmask 261120   ;;  %vm332_vm1 = vcmask 97280   ;;  %v606_v10 = vmov 0  }
   0xc   : > { %s648_s20 = sshll.u32 %s710_s19, 4  ;;  %576 = vset.pattern.permute.xlu2 %v606_v10  ;;  %577 = vset.pattern.permute.xlu0 %v606_v10  ;;  %s281_s10 = scalar_lea.vmem %s706_s3, %s710_s19 }
   0xd   : > { %s273_s23 = scalar_lea.vmem %s704_s1, %s648_s20  ;;  %s268_s26 = scalar_lea.vmem %s703_s0, %s648_s20  ;;  %v390_v47 = vld [vmem:[%s281_s10] sm:$0x1] }
   0xe   : > { %v295_v0 = vld [vmem:[%s273_s23 + $0x8] sm:$0xf]  ;;  %v294_v1 = vld [vmem:[%s273_s23] sm:$0xff]  ;;  %s291_s29 = scalar_lea.vmem %s708_s5, %s648_s20  ;;  %s278_s7 = scalar_lea.vmem %s705_s2, %s648_s20 }
   0xf   : > { %554 = vmatpush.xpose.msk.msra.mxu0 %vm296_vm0, %v295_v0  ;;  %565 = vmatpush.xpose.msk.msra.mxu1 %vm296_vm0, %v295_v0  ;;  %v292_v2 = vld [vmem:[%s268_s26] sm:$0xff]  ;;  %v293_v3 = vld [vmem:[%s268_s26 + $0x8] sm:$0xff]  ;;  %s286_s13 = scalar_lea.vmem %s707_s4, %s648_s20 }
  0x10   : > { %v384_v9 = vld [vmem:[%s278_s7] sm:$0xff]  ;;  %v385_v11 = vld [vmem:[%s278_s7 + $0x8] sm:$0xff] }
  0x11   : > { %578 = vlog2.f32 %v384_v9 }
  0x12   : > { %580 = vlog2.f32 %v385_v11 }
  0x13   : > { %555 = vmatpush.xpose.msk.msra.mxu0 %vm296_vm0, %v294_v1  ;;  %566 = vmatpush.xpose.msk.msra.mxu1 %vm296_vm0, %v294_v1 }
  0x16   : > { %556 = vmatmul.msk.f32.vlgmr.msra.gmra.mxu0 %vm296_vm0, %v292_v2  ;;  %557 = vmatmul.msk.f32.vlgmr.msra.gmra.mxu1 %vm296_vm0, %v293_v3 }
  0x17   : > { %v579_v12 = vpop.eup %578 }
  0x18   : > { %v387_v13 = vmul.f32 0.6931472, %v579_v12  ;;  %v581_v14 = vpop.eup %580 }
  0x19   : > { %v389_v18 = vmul.f32 0.6931472, %v581_v14 }
  0x1a   : > { %395 = vperm.xlu2 %576, %v387_v13  }
  0x22   : > { %400 = vperm.xlu2 %576, %v389_v18  }
  0x74   : > { %v396_v58 = vpop.permute.xlu2 %395 }
  0x93   : > { %v662_v4 = vpop.f32.mrf.mxu0  ;;  %v664_v5 = vpop.f32.mrf.mxu1 }
  0x94   : > { %333 = vst.msk [vmem:[%s291_s29] sm:$0xff] %vm332_vm1, %v662_v4  ;;  %v335_v6 = vsel %vm332_vm1, %v662_v4, -inf  ;;  %v338_v7 = vsel %vm332_vm1, %v664_v5, -inf }
  0x95   : > { %334 = vst.msk [vmem:[%s291_s29 + $0x8] sm:$0xff] %vm332_vm1, %v664_v5  ;;  %336 = vmax.xlane.f32.xlu0 %v335_v6  ;;  %v359_v8 = vmax.f32 %v335_v6, %v338_v7  ;;  %v401_v6 = vpop.permute.xlu2 %400 }
  0x97   : > { %v360_v26 = vrot.slane %v359_v8, 4 }
  0x99   : > { %v361_v27 = vmax.f32 %v359_v8, %v360_v26 }
  0x9b   : > { %v362_v28 = vrot.slane %v361_v27, 2 }
  0x9d   : > { %339 = vmax.xlane.f32.xlu0 %v338_v7  ;;  %v363_v29 = vmax.f32 %v361_v27, %v362_v28 }
  0x9f   : > { %v364_v30 = vrot.slane %v363_v29, 1 }
  0xa1   : > { %v365_v31 = vmax.f32 %v363_v29, %v364_v30 }
  0xa3   : > { %v366_v32 = vsub.f32 %v662_v4, %v365_v31  ;;  %v367_v33 = vsub.f32 %v664_v5, %v365_v31 }
  0xa5   : > { %v368_v34 = vmul.f32 1.442695, %v366_v32  ;;  %v370_v35 = vmul.f32 1.442695, %v367_v33 }
 0x108   : > { %v337_v15 = vpop.xlane.xlu0 %336 }
 0x109   : > { %v341_v16 = vsub.f32 %v662_v4, %v337_v15 }
 0x10b   : > { %v343_v17 = vmul.f32 1.442695, %v341_v16 }
 0x10d   : > { %582 = vpow2.f32 %v343_v17 }
 0x110   : > { %v340_v19 = vpop.xlane.xlu0 %339 }
 0x111   : > { %v342_v20 = vsub.f32 %v664_v5, %v340_v19 }
 0x113   : > { %v583_v21 = vpop.eup %582  ;;  %v345_v22 = vmul.f32 1.442695, %v342_v20 }
 0x114   : > { %v347_v23 = vsel %vm332_vm1, %v583_v21, 0.0 }
 0x115   : > { %584 = vpow2.f32 %v345_v22  ;;  %348 = vadd.xlane.f32.xlu1 %v347_v23 }
 0x116   : > { %586 = vpow2.f32 %v368_v34 }
 0x117   : > { %588 = vpow2.f32 %v370_v35 }
 0x11b   : > { %v585_v24 = vpop.eup %584 }
 0x11c   : > { %v350_v25 = vsel %vm332_vm1, %v585_v24, 0.0  ;;  %v587_v36 = vpop.eup %586 }
 0x11d   : > { %351 = vadd.xlane.f32.xlu1 %v350_v25  ;;  %v589_v37 = vpop.eup %588  ;;  %v372_v38 = vsel %vm332_vm1, %v587_v36, 0.0 }
 0x11e   : > { %v373_v39 = vsel %vm332_vm1, %v589_v37, 0.0 }
 0x11f   : > { %v374_v40 = vadd.f32 %v373_v39, %v372_v38 }
 0x121   : > { %v375_v41 = vrot.slane %v374_v40, 4 }
 0x123   : > { %v376_v42 = vadd.f32 %v375_v41, %v374_v40 }
 0x125   : > { %v377_v43 = vrot.slane %v376_v42, 2 }
 0x127   : > { %v378_v44 = vadd.f32 %v377_v43, %v376_v42 }
 0x129   : > { %v379_v45 = vrot.slane %v378_v44, 1 }
 0x12b   : > { %v380_v46 = vadd.f32 %v379_v45, %v378_v44 }
 0x12d   : > { %590 = vlog2.f32 %v380_v46 }
 0x12e   : > { %592 = vlog2.f32 %v390_v47 }
 0x133   : > { %v591_v48 = vpop.eup %590 }
 0x134   : > { %v593_v50 = vpop.eup %592  ;;  %v382_v52 = vmul.f32 0.6931472, %v591_v48 }
 0x135   : > { %v392_v51 = vmul.f32 0.6931472, %v593_v50 }
 0x136   : > { %v383_v56 = vadd.f32 %v382_v52, %v365_v31 }
 0x137   : > { %v404_v55 = vperm.slane %v392_v51, 0 }
 0x138   : > { %v410_v62 = vsub.f32 %v662_v4, %v383_v56  ;;  %v411_v8 = vsub.f32 %v664_v5, %v383_v56 }
 0x139   : > { %v406_v61 = vadd.f32 %v404_v55, %v396_v58  ;;  %v407_v9 = vadd.f32 %v404_v55, %v401_v6 }
 0x188   : > { %v349_v49 = vpop.xlane.xlu1 %348 }
 0x189   : > { %594 = vlog2.f32 %v349_v49 }
 0x18f   : > { %v595_v53 = vpop.eup %594 }
 0x190   : > { %v354_v54 = vmul.f32 0.6931472, %v595_v53  ;;  %v352_v57 = vpop.xlane.xlu1 %351 }
 0x191   : > { %596 = vlog2.f32 %v352_v57 }
 0x192   : > { %v357_v59 = vadd.f32 %v354_v54, %v337_v15 }
 0x194   : > { %v408_v60 = vsub.f32 %v662_v4, %v357_v59 }
 0x196   : > { %v412_v63 = vadd.f32 %v410_v62, %v408_v60 }
 0x197   : > { %v597_v0 = vpop.eup %596 }
 0x198   : > { %v414_v1 = vadd.f32 %v412_v63, %v406_v61  ;;  %v356_v2 = vmul.f32 0.6931472, %v597_v0 }
 0x19a   : > { %416 = vst.msk [vmem:[%s286_s13] sm:$0xff] %vm332_vm1, %v414_v1  ;;  %v358_v3 = vadd.f32 %v356_v2, %v340_v19 }
 0x19c   : > { %v409_v7 = vsub.f32 %v664_v5, %v358_v3 }
 0x19e   : > { %v413_v10 = vadd.f32 %v411_v8, %v409_v7 }
 0x1a0   : > { %v415_v11 = vadd.f32 %v413_v10, %v407_v9 }
 0x1a2   : > { %417 = vst.msk [vmem:[%s286_s13 + $0x8] sm:$0xff] %vm332_vm1, %v415_v11 }
 0x1a3 PF: > { %s16_s18 = sadd.s32 1, %s604_s18  }
 0x1a4   : > { %p13_p4 = scmp.ge.s32.totalorder %s16_s18, 4  }
 0x1a6   :  { %15 = sbr.rel (!%p13_p4) target bundleno = 1 (0x1), region = 87 }

// kernel: match_assignment.3
= control target key start
LH: loop header
LB: loop body
LE: loop exit
PB: predicated region body
PF: predicated region fallthrough
CT: control target
= control target key end

     0   :  { %vm40_vm0 = vcmask 261120   ;;  %vm194_vm4 = vcmask 7168   ;;  %s365_s0 = inlined_call_operand.vmem [shape: bf16[32,32], index: 0, kind: input, shape index: {}]   ;;  %s366_s3 = inlined_call_operand.vmem [shape: f32[1,32], index: 3, kind: input, shape index: {}]   ;;  %s367_s1 = inlined_call_operand.vmem [shape: f32[32,32], index: 1, kind: input, shape index: {}]   ;;  %s368_s4 = inlined_call_operand.<no memory space> [shape: f32[1,1], index: 4, kind: input, shape index: {}]   ;;  %s369_s2 = inlined_call_operand.vmem [shape: f32[1,32], index: 2, kind: input, shape index: {}]   ;;  %s370_s5 = inlined_call_operand.vmem [shape: f32[32,32], index: 5, kind: output, shape index: {0}]   ;;  %s371_s6 = inlined_call_operand.vmem [shape: f32[32,1], index: 6, kind: output, shape index: {1}]  }
   0x1   :  { %v223_v0 = vld [vmem:[%s365_s0 + $0x8] sm:$0xff]   ;;  %v236_v1 = vld [vmem:[%s366_s3] ss:$0 sm:$0xff]  ;;  %v12_v2 = vstv %s368_s4  ;;  %v35_v5 = vld [vmem:[%s367_s1 + $0x18] sm:$0xff] }
   0x2   :  { %v221_v3 = vunpack.c.l.bf16 %v223_v0  ;;  %v216_v4 = vld [vmem:[%s365_s0] sm:$0xff]   ;;  %v34_v6 = vld [vmem:[%s367_s1 + $0x10] sm:$0xff]  ;;  %13 = vst [vmem:[#allocation2] sm:$0x1] %v12_v2  ;;  %225 = vmatpush.msra.mxu2 %v35_v5  ;;  %226 = vmatpush.msra.mxu3 %v35_v5  ;;  %v222_v9 = vunpack.c.h.bf16 %v223_v0  ;;  %v33_v10 = vld [vmem:[%s367_s1 + $0x8] sm:$0xff] }
   0x3   :  { %v217_v7 = vunpack.c.l.bf16 %v216_v4  ;;  %65 = vmatpush.msra.mxu0 %v35_v5  ;;  %224 = vmatpush.msra.mxu1 %v35_v5  ;;  %v218_v12 = vunpack.c.h.bf16 %v216_v4  ;;  %v32_v14 = vld [vmem:[%s367_s1] sm:$0xff] }
   0x4   :  { %v96_v8 = vmul.f32 %v236_v1, %v221_v3  ;;  %228 = vmatpush.msra.mxu2 %v34_v6  ;;  %229 = vmatpush.msra.mxu3 %v34_v6  ;;  %v97_v16 = vmul.f32 %v236_v1, %v222_v9  ;;  %v238_v37 = vld [vmem:[%s369_s2] ss:$0 sm:$0xff] }
   0x5   :  { %v94_v11 = vmul.f32 %v236_v1, %v217_v7  ;;  %66 = vmatpush.msra.mxu0 %v34_v6  ;;  %227 = vmatpush.msra.mxu1 %v34_v6  ;;  %v95_v17 = vmul.f32 %v236_v1, %v218_v12 }
   0x6   :  { %v104_v13 = vsel %vm40_vm0, %v96_v8, 0.0  ;;  %231 = vmatpush.msra.mxu2 %v33_v10  ;;  %232 = vmatpush.msra.mxu3 %v33_v10  ;;  %v107_v18 = vsel %vm40_vm0, %v97_v16, 0.0 }
   0x7   :  { %105 = vadd.xlane.f32.xlu1 %v104_v13  ;;  %v98_v15 = vsel %vm40_vm0, %v94_v11, 0.0  ;;  %67 = vmatpush.msra.mxu0 %v33_v10  ;;  %v101_v19 = vsel %vm40_vm0, %v95_v17, 0.0 }
   0x8   :  { %99 = vadd.xlane.f32.xlu0 %v98_v15  ;;  %234 = vmatpush.msra.mxu2 %v32_v14 }
   0x9   :  { %235 = vmatpush.msra.mxu3 %v32_v14  ;;  %209 = vmatmul.msk.f32.vlgmr.msra.gmra.mxu2 %vm40_vm0, %v221_v3  ;;  %v237_v20 = vld [vmem:[#allocation2] ss:$0 sm:$0xff] }
   0xa   :  { %210 = vmatmul.msk.f32.vlgmr.msra.gmra.mxu3 %vm40_vm0, %v222_v9  ;;  %230 = vmatpush.msra.mxu1 %v33_v10 }
   0xb   :  { %68 = vmatpush.msra.mxu0 %v32_v14 }
   0xc   :  { %233 = vmatpush.msra.mxu1 %v32_v14  ;;  %207 = vmatmul.msk.f32.vlgmr.msra.gmra.mxu0 %vm40_vm0, %v217_v7 }
   0xd   :  { %208 = vmatmul.msk.f32.vlgmr.msra.gmra.mxu1 %vm40_vm0, %v218_v12 }
   0xf   :  { %108 = vadd.xlane.f32.xlu1 %v107_v18 }
  0x10   :  { %102 = vadd.xlane.f32.xlu0 %v101_v19 }
  0x7a   :  { %v106_v21 = vpop.xlane.xlu1 %105 }
  0x7b   :  { %v116_v22 = vadd.f32 %v237_v20, %v106_v21  ;;  %v100_v23 = vpop.xlane.xlu0 %99 }
  0x7c   :  { %v114_v24 = vadd.f32 %v237_v20, %v100_v23 }
  0x7d   :  { %v213_v25 = vmul.f32 -1.442695, %v116_v22 }
  0x7e   :  { %v211_v26 = vmul.f32 -1.442695, %v114_v24 }
  0x7f   :  { %239 = vpow2.f32 %v213_v25 }
  0x80   :  { %241 = vpow2.f32 %v211_v26 }
  0x82   :  { %v109_v27 = vpop.xlane.xlu1 %108 }
  0x83   :  { %v117_v28 = vadd.f32 %v237_v20, %v109_v27  ;;  %v103_v29 = vpop.xlane.xlu0 %102 }
  0x84   :  { %v115_v30 = vadd.f32 %v237_v20, %v103_v29 }
  0x85   :  { %v240_v31 = vpop.eup %239  ;;  %v214_v32 = vmul.f32 -1.442695, %v117_v28 }
  0x86   :  { %v242_v33 = vpop.eup %241  ;;  %v132_v34 = vadd.f32 1.0, %v240_v31  ;;  %v212_v35 = vmul.f32 -1.442695, %v115_v30 }
  0x87   :  { %v130_v36 = vadd.f32 1.0, %v242_v33  ;;  %243 = vpow2.f32 %v214_v32 }
  0x88   :  { %245 = vrcp.f32 %v132_v34  ;;  %v173_v56 = vand.u32 2147483647, %v132_v34  ;;  %v175_v58 = vand.u32 2147483648, %v132_v34  ;;  %vm169_vm3 = vweird.f32 %v132_v34 }
  0x89   :  { %247 = vrcp.f32 %v130_v36  ;;  %v70_v38 = vpop.f32.mrf.mxu0  ;;  %v145_v63 = vand.u32 2147483648, %v130_v36  ;;  %v143_v1 = vand.u32 2147483647, %v130_v36  ;;  %vm139_vm6 = vweird.f32 %v130_v36 }
  0x8a   :  { %249 = vpow2.f32 %v212_v35  ;;  %v71_v39 = vadd.f32 %v238_v37, %v70_v38  ;;  %v73_v40 = vpop.f32.mrf.mxu1  ;;  %v176_v4 = vor.u32 1.1754944e-38, %v175_v58  ;;  %vm174_vm7 = vcmp.eq.f32.partialorder %v173_v56, 8.507059e+37 }
  0x8b   :  { %v74_v41 = vadd.f32 %v238_v37, %v73_v40  ;;  %v146_v7 = vor.u32 1.1754944e-38, %v145_v63  ;;  %vm144_vm9 = vcmp.eq.f32.partialorder %v143_v1, 8.507059e+37 }
  0x8c   :  { %v82_v43 = vmul.f32 0.4204482, %v71_v39  ;;  %v76_v44 = vpop.f32.mrf.mxu2 }
  0x8d   :  { %v244_v42 = vpop.eup %243  ;;  %v83_v47 = vmul.f32 0.4204482, %v74_v41  ;;  %v77_v48 = vadd.f32 %v238_v37, %v76_v44  ;;  %v79_v49 = vpop.f32.mrf.mxu3 }
  0x8e   :  { %v246_v45 = vpop.eup %245  ;;  %v325_v46 = vadd.f32 1.0, %v244_v42  ;;  %86 = vst.msk [vmem:[%s370_s5] sm:$0xff] %vm40_vm0, %v82_v43  ;;  %v80_v52 = vadd.f32 %v238_v37, %v79_v49 }
  0x8f   :  { %v248_v50 = vpop.eup %247  ;;  %v165_v51 = vmul.f32 %v246_v45, %v132_v34  ;;  %87 = vst.msk [vmem:[%s370_s5 + $0x8] sm:$0xff] %vm40_vm0, %v83_v47  ;;  %v84_v60 = vmul.f32 0.4204482, %v77_v48  ;;  %vm170_vm1 = vweird.f32 %v246_v45 }
  0x90   :  { %v250_v53 = vpop.eup %249  ;;  %v135_v54 = vmul.f32 %v248_v50, %v130_v36  ;;  %251 = vrcp.f32 %v325_v46  ;;  %v85_v61 = vmul.f32 0.4204482, %v80_v52  ;;  %vm140_vm2 = vweird.f32 %v248_v50  ;;  %vm171_vm5 = vmor %vm169_vm3, %vm170_vm1 }
  0x91   :  { %v166_v55 = vsub.f32 1.0, %v165_v51  ;;  %v131_v57 = vadd.f32 1.0, %v250_v53  ;;  %88 = vst.msk [vmem:[%s370_s5 + $0x10] sm:$0xff] %vm40_vm0, %v84_v60  ;;  %vm141_vm8 = vmor %vm139_vm6, %vm140_vm2  ;;  %v190_v14 = vand.u32 2147483648, %v325_v46  ;;  %v188_v17 = vand.u32 2147483647, %v325_v46 }
  0x92   :  { %v136_v59 = vsub.f32 1.0, %v135_v54  ;;  %89 = vst.msk [vmem:[%s370_s5 + $0x18] sm:$0xff] %vm40_vm0, %v85_v61  ;;  %vm184_vm11 = vweird.f32 %v325_v46 }
  0x93   :  { %v167_v62 = vmul.f32 %v246_v45, %v166_v55  ;;  %253 = vrcp.f32 %v131_v57  ;;  %v160_v20 = vand.u32 2147483648, %v131_v57  ;;  %v191_v21 = vor.u32 1.1754944e-38, %v190_v14 }
  0x94   :  { %v137_v0 = vmul.f32 %v248_v50, %v136_v59  ;;  %v158_v23 = vand.u32 2147483647, %v131_v57  ;;  %vm189_vm14 = vcmp.eq.f32.partialorder %v188_v17, 8.507059e+37  ;;  %vm154_vm15 = vweird.f32 %v131_v57 }
  0x95   :  { %v168_v2 = vadd.f32 %v246_v45, %v167_v62  ;;  %v161_v27 = vor.u32 1.1754944e-38, %v160_v20 }
  0x96   :  { %v252_v3 = vpop.eup %251  ;;  %v138_v5 = vadd.f32 %v248_v50, %v137_v0  ;;  %vm159_vm1 = vcmp.eq.f32.partialorder %v158_v23, 8.507059e+37 }
  0x97   :  { %v172_v6 = vsel %vm171_vm5, %v246_v45, %v168_v2  ;;  %v180_v8 = vmul.f32 %v252_v3, %v325_v46  ;;  %vm185_vm10 = vweird.f32 %v252_v3 }
  0x98   :  { %v177_v9 = vsel %vm174_vm7, %v176_v4, %v172_v6  ;;  %v142_v10 = vsel %vm141_vm8, %v248_v50, %v138_v5  ;;  %vm186_vm12 = vmor %vm184_vm11, %vm185_vm10 }
  0x99   :  { %v254_v11 = vpop.eup %253  ;;  %197 = vst.msk [vmem:[%s371_s6 + $0x10] sm:$0xff] %vm194_vm4, %v177_v9  ;;  %v147_v12 = vsel %vm144_vm9, %v146_v7, %v142_v10  ;;  %v181_v13 = vsub.f32 1.0, %v180_v8 }
  0x9a   :  { %195 = vst.msk [vmem:[%s371_s6] sm:$0xff] %vm194_vm4, %v147_v12  ;;  %v150_v15 = vmul.f32 %v254_v11, %v131_v57  ;;  %vm155_vm13 = vweird.f32 %v254_v11 }
  0x9b   :  { %v182_v16 = vmul.f32 %v252_v3, %v181_v13  ;;  %vm156_vm0 = vmor %vm154_vm15, %vm155_vm13 }
  0x9c   :  { %v151_v18 = vsub.f32 1.0, %v150_v15 }
  0x9d   :  { %v183_v19 = vadd.f32 %v252_v3, %v182_v16 }
  0x9e   :  { %v152_v22 = vmul.f32 %v254_v11, %v151_v18 }
  0x9f   :  { %v187_v24 = vsel %vm186_vm12, %v252_v3, %v183_v19 }
  0xa0   :  { %v192_v25 = vsel %vm189_vm14, %v191_v21, %v187_v24  ;;  %v153_v26 = vadd.f32 %v254_v11, %v152_v22 }
  0xa1   :  { %198 = vst.msk [vmem:[%s371_s6 + $0x18] sm:$0xff] %vm194_vm4, %v192_v25 }
  0xa2   :  { %v157_v28 = vsel %vm156_vm0, %v254_v11, %v153_v26 }
  0xa3   :  { %v162_v29 = vsel %vm159_vm1, %v161_v27, %v157_v28 }
  0xa4   :  { %196 = vst.msk [vmem:[%s371_s6 + $0x8] sm:$0xff] %vm194_vm4, %v162_v29 }

// kernel: match_assignment.4
= control target key start
LH: loop header
LB: loop body
LE: loop exit
PB: predicated region body
PF: predicated region fallthrough
CT: control target
= control target key end

     0   :  { %vm38_vm0 = vcmask 261120   ;;  %vm160_vm4 = vcmask 7168   ;;  %s298_s0 = inlined_call_operand.vmem [shape: bf16[24,32], index: 0, kind: input, shape index: {}]   ;;  %s299_s3 = inlined_call_operand.vmem [shape: f32[1,32], index: 3, kind: input, shape index: {}]   ;;  %s300_s1 = inlined_call_operand.vmem [shape: f32[32,32], index: 1, kind: input, shape index: {}]   ;;  %s301_s4 = inlined_call_operand.<no memory space> [shape: f32[1,1], index: 4, kind: input, shape index: {}]   ;;  %s302_s2 = inlined_call_operand.vmem [shape: f32[1,32], index: 2, kind: input, shape index: {}]   ;;  %s303_s5 = inlined_call_operand.vmem [shape: f32[24,32], index: 5, kind: output, shape index: {0}]   ;;  %s304_s6 = inlined_call_operand.vmem [shape: f32[24,1], index: 6, kind: output, shape index: {1}]  }
   0x1   :  { %v26_v0 = vld [vmem:[%s298_s0 + $0x8] sm:$0xf]  ;;  %v190_v1 = vld [vmem:[%s299_s3] ss:$0 sm:$0xff]  ;;  %v12_v2 = vstv %s301_s4  ;;  %v33_v5 = vld [vmem:[%s300_s1 + $0x18] sm:$0xff] }
   0x2   :  { %v29_v3 = vunpack.c.l.bf16 %v26_v0  ;;  %v179_v4 = vld [vmem:[%s298_s0] sm:$0xff]   ;;  %v32_v6 = vld [vmem:[%s300_s1 + $0x10] sm:$0xff]  ;;  %13 = vst [vmem:[#allocation2] sm:$0x1] %v12_v2  ;;  %183 = vmatpush.msra.mxu2 %v33_v5  ;;  %60 = vmatpush.msra.mxu0 %v33_v5  ;;  %v31_v9 = vld [vmem:[%s300_s1 + $0x8] sm:$0xff] }
   0x3   :  { %v180_v7 = vunpack.c.l.bf16 %v179_v4  ;;  %182 = vmatpush.msra.mxu1 %v33_v5  ;;  %v181_v11 = vunpack.c.h.bf16 %v179_v4  ;;  %v30_v13 = vld [vmem:[%s300_s1] sm:$0xff] }
   0x4   :  { %v86_v8 = vmul.f32 %v190_v1, %v29_v3  ;;  %185 = vmatpush.msra.mxu2 %v32_v6  ;;  %61 = vmatpush.msra.mxu0 %v32_v6  ;;  %v192_v30 = vld [vmem:[%s302_s2] ss:$0 sm:$0xff] }
   0x5   :  { %v84_v10 = vmul.f32 %v190_v1, %v180_v7  ;;  %184 = vmatpush.msra.mxu1 %v32_v6  ;;  %v85_v15 = vmul.f32 %v190_v1, %v181_v11 }
   0x6   :  { %v93_v12 = vsel %vm38_vm0, %v86_v8, 0.0  ;;  %187 = vmatpush.msra.mxu2 %v31_v9  ;;  %62 = vmatpush.msra.mxu0 %v31_v9 }
   0x7   :  { %94 = vadd.xlane.f32.xlu1 %v93_v12  ;;  %v87_v14 = vsel %vm38_vm0, %v84_v10, 0.0  ;;  %186 = vmatpush.msra.mxu1 %v31_v9  ;;  %v90_v16 = vsel %vm38_vm0, %v85_v15, 0.0 }
   0x8   :  { %88 = vadd.xlane.f32.xlu0 %v87_v14  ;;  %189 = vmatpush.msra.mxu2 %v30_v13 }
   0x9   :  { %174 = vmatmul.msk.f32.vlgmr.msra.gmra.mxu2 %vm38_vm0, %v29_v3  ;;  %63 = vmatpush.msra.mxu0 %v30_v13  ;;  %v191_v17 = vld [vmem:[#allocation2] ss:$0 sm:$0xff] }
   0xa   :  { %188 = vmatpush.msra.mxu1 %v30_v13  ;;  %172 = vmatmul.msk.f32.vlgmr.msra.gmra.mxu0 %vm38_vm0, %v180_v7 }
   0xb   :  { %173 = vmatmul.msk.f32.vlgmr.msra.gmra.mxu1 %vm38_vm0, %v181_v11 }
  0x10   :  { %91 = vadd.xlane.f32.xlu0 %v90_v16 }
  0x7a   :  { %v95_v18 = vpop.xlane.xlu1 %94 }
  0x7b   :  { %v102_v19 = vadd.f32 %v191_v17, %v95_v18  ;;  %v89_v20 = vpop.xlane.xlu0 %88 }
  0x7c   :  { %v100_v21 = vadd.f32 %v191_v17, %v89_v20 }
  0x7d   :  { %v177_v22 = vmul.f32 -1.442695, %v102_v19 }
  0x7e   :  { %v175_v23 = vmul.f32 -1.442695, %v100_v21 }
  0x7f   :  { %193 = vpow2.f32 %v177_v22 }
  0x80   :  { %195 = vpow2.f32 %v175_v23 }
  0x83   :  { %v92_v24 = vpop.xlane.xlu0 %91 }
  0x84   :  { %v101_v25 = vadd.f32 %v191_v17, %v92_v24 }
  0x85   :  { %v194_v26 = vpop.eup %193 }
  0x86   :  { %v196_v27 = vpop.eup %195  ;;  %v114_v28 = vadd.f32 1.0, %v194_v26  ;;  %v176_v29 = vmul.f32 -1.442695, %v101_v25 }
  0x87   :  { %v112_v31 = vadd.f32 1.0, %v196_v27  ;;  %v65_v32 = vpop.f32.mrf.mxu0 }
  0x88   :  { %197 = vrcp.f32 %v114_v28  ;;  %v68_v33 = vpop.f32.mrf.mxu1  ;;  %v66_v34 = vadd.f32 %v192_v30, %v65_v32  ;;  %vm150_vm1 = vweird.f32 %v114_v28  ;;  %v154_v48 = vand.u32 2147483647, %v114_v28 }
  0x89   :  { %199 = vrcp.f32 %v112_v31  ;;  %v69_v35 = vadd.f32 %v192_v30, %v68_v33  ;;  %v156_v49 = vand.u32 2147483648, %v114_v28  ;;  %v126_v52 = vand.u32 2147483648, %v112_v31 }
  0x8a   :  { %201 = vpow2.f32 %v176_v29  ;;  %v74_v36 = vmul.f32 0.4204482, %v66_v34  ;;  %v124_v54 = vand.u32 2147483647, %v112_v31  ;;  %vm120_vm6 = vweird.f32 %v112_v31 }
  0x8b   :  { %v75_v37 = vmul.f32 0.4204482, %v69_v35  ;;  %v157_v56 = vor.u32 1.1754944e-38, %v156_v49  ;;  %vm155_vm7 = vcmp.eq.f32.partialorder %v154_v48, 8.507059e+37  ;;  %v127_v59 = vor.u32 1.1754944e-38, %v126_v52 }
  0x8c   :  { %v71_v38 = vpop.f32.mrf.mxu2  ;;  %77 = vst.msk [vmem:[%s303_s5] sm:$0xff] %vm38_vm0, %v74_v36  ;;  %vm125_vm9 = vcmp.eq.f32.partialorder %v124_v54, 8.507059e+37 }
  0x8d   :  { %v72_v40 = vadd.f32 %v192_v30, %v71_v38  ;;  %78 = vst.msk [vmem:[%s303_s5 + $0x8] sm:$0xff] %vm38_vm0, %v75_v37 }
  0x8e   :  { %v198_v39 = vpop.eup %197 }
  0x8f   :  { %v200_v41 = vpop.eup %199  ;;  %v146_v42 = vmul.f32 %v198_v39, %v114_v28  ;;  %v76_v45 = vmul.f32 0.4204482, %v72_v40  ;;  %vm151_vm2 = vweird.f32 %v198_v39 }
  0x90   :  { %v202_v43 = vpop.eup %201  ;;  %v116_v44 = vmul.f32 %v200_v41, %v112_v31  ;;  %vm121_vm3 = vweird.f32 %v200_v41  ;;  %vm152_vm5 = vmor %vm150_vm1, %vm151_vm2 }
  0x91   :  { %v147_v46 = vsub.f32 1.0, %v146_v42  ;;  %v113_v47 = vadd.f32 1.0, %v202_v43  ;;  %79 = vst.msk [vmem:[%s303_s5 + $0x10] sm:$0xff] %vm38_vm0, %v76_v45  ;;  %vm122_vm8 = vmor %vm120_vm6, %vm121_vm3 }
  0x92   :  { %v117_v50 = vsub.f32 1.0, %v116_v44 }
  0x93   :  { %v148_v51 = vmul.f32 %v198_v39, %v147_v46  ;;  %203 = vrcp.f32 %v113_v47  ;;  %v141_v2 = vand.u32 2147483648, %v113_v47  ;;  %v139_v4 = vand.u32 2147483647, %v113_v47 }
  0x94   :  { %v118_v53 = vmul.f32 %v200_v41, %v117_v50  ;;  %vm135_vm11 = vweird.f32 %v113_v47 }
  0x95   :  { %v149_v55 = vadd.f32 %v198_v39, %v148_v51  ;;  %v142_v6 = vor.u32 1.1754944e-38, %v141_v2  ;;  %vm140_vm13 = vcmp.eq.f32.partialorder %v139_v4, 8.507059e+37 }
  0x96   :  { %v119_v57 = vadd.f32 %v200_v41, %v118_v53 }
  0x97   :  { %v153_v58 = vsel %vm152_vm5, %v198_v39, %v149_v55 }
  0x98   :  { %v158_v60 = vsel %vm155_vm7, %v157_v56, %v153_v58  ;;  %v123_v61 = vsel %vm122_vm8, %v200_v41, %v119_v57 }
  0x99   :  { %v204_v62 = vpop.eup %203  ;;  %163 = vst.msk [vmem:[%s304_s6 + $0x10] sm:$0xff] %vm160_vm4, %v158_v60  ;;  %v128_v63 = vsel %vm125_vm9, %v127_v59, %v123_v61 }
  0x9a   :  { %161 = vst.msk [vmem:[%s304_s6] sm:$0xff] %vm160_vm4, %v128_v63  ;;  %v131_v0 = vmul.f32 %v204_v62, %v113_v47  ;;  %vm136_vm10 = vweird.f32 %v204_v62 }
  0x9b   :  { %vm137_vm12 = vmor %vm135_vm11, %vm136_vm10 }
  0x9c   :  { %v132_v1 = vsub.f32 1.0, %v131_v0 }
  0x9e   :  { %v133_v3 = vmul.f32 %v204_v62, %v132_v1 }
  0xa0   :  { %v134_v5 = vadd.f32 %v204_v62, %v133_v3 }
  0xa2   :  { %v138_v7 = vsel %vm137_vm12, %v204_v62, %v134_v5 }
  0xa3   :  { %v143_v8 = vsel %vm140_vm13, %v142_v6, %v138_v7 }
  0xa4   :  { %162 = vst.msk [vmem:[%s304_s6 + $0x8] sm:$0xff] %vm160_vm4, %v143_v8 }

</bundles_post_ra>
